<compile_context>
chip_gen: v7x
topology: tpu7x:2x2x1
jax: 0.10.0
libtpu: 0.0.40
codegen_flags: <defaults>
</compile_context>

<pallas_src>
import functools
import math

import jax
import jax.numpy as jnp
from jax.experimental import pallas as pl
from jax.experimental.pallas import tpu as pltpu


def _has_bf16_eup():
    """bf16 transcendentals exist on v6e/v7x; v5e and older do not."""
    try:
        kind = jax.devices()[0].device_kind.lower()
    except Exception:
        return False
    return ("v6" in kind) or ("v7" in kind)


def _head_kernel(x_ref, wq_ref, wkv_ref, o_ref, *, bf16_exp):
    # x_ref:   (1, T,  C) f32  — full sequence (shared by Q tile / K / V)
    # wq_ref:  (C, H)     bf16
    # wkv_ref: (C, 2H)    bf16  — [W_k | W_v] fused
    # o_ref:   (1, TQ, H) f32
    T, C = x_ref.shape[1], x_ref.shape[2]
    TQ = o_ref.shape[1]
    H = wq_ref.shape[1]

    # The PyTorch module scales by the embedding dim C (not head_size).
    scale = 1.0 / math.sqrt(C)

    q0 = pl.program_id(1) * TQ            # global row offset of this query tile

    # In-kernel bf16 cast of x (free VPU filler); the f32 block is DMA'd once
    # per batch element because its block index ignores the query-tile axis.
    xkv = x_ref[0].astype(jnp.bfloat16)                         # (T, C)
    if TQ == T:                       # common case: one query tile per sequence
        xq = xkv
    else:
        start = pl.multiple_of(q0, TQ)
        xq = x_ref[0, pl.ds(start, TQ), :].astype(jnp.bfloat16)  # (TQ, C)

    # Fused K|V projection: one MXU pass with N = 2H (= 128 for head_size 64).
    kv = jnp.dot(xkv, wkv_ref[...], preferred_element_type=jnp.float32)  # (T, 2H)
    # The :H / H: split sits at a 64-lane offset -> tiny sub-vreg relayout
    # (~T*2H elems); cheaper than halving the MXU N-width with two dots.
    k = kv[:, :H].astype(jnp.bfloat16)                           # (T, H)
    v = kv[:, H:].astype(jnp.bfloat16)                           # (T, H)

    # Q projection on the query tile only; fold the softmax scale into q
    # (TQ*H mults instead of TQ*T on the score matrix).
    q = jnp.dot(xq, wq_ref[...], preferred_element_type=jnp.float32)     # (TQ, H)
    q = (q * scale).astype(jnp.bfloat16)

    # scores = q @ k^T, contracting the last dims (no materialized transpose).
    scores = jax.lax.dot_general(
        q, k, (((1,), (1,)), ((), ())),
        preferred_element_type=jnp.float32)                              # (TQ, T)

    # Causal (lower-triangular) mask with the global query-row offset.
    row = q0 + jax.lax.broadcasted_iota(jnp.int32, (TQ, T), 0)
    col = jax.lax.broadcasted_iota(jnp.int32, (TQ, T), 1)
    scores = jnp.where(col <= row, scores, -jnp.inf)

    # Numerically-stable softmax along keys.  max / sum stay in f32; the exp
    # runs in bf16 on v6e/v7x (2x EUP throughput), f32 elsewhere.
    m = jnp.max(scores, axis=-1, keepdims=True)
    s = scores - m
    if bf16_exp:
        e = jnp.exp(s.astype(jnp.bfloat16))                               # bf16 EUP
        denom = jnp.sum(e.astype(jnp.float32), axis=-1, keepdims=True)   # f32 acc
        inv = pl.reciprocal(denom, approx=True).astype(jnp.bfloat16)
        wei = e * inv                                                     # (TQ, T) bf16
    else:
        e = jnp.exp(s)
        denom = jnp.sum(e, axis=-1, keepdims=True)
        wei = (e * pl.reciprocal(denom, approx=True)).astype(jnp.bfloat16)

    # Dropout: identity in eval mode.

    out = jnp.dot(wei, v, preferred_element_type=jnp.float32)             # (TQ, H)
    o_ref[0] = out.astype(o_ref.dtype)


def pack_head_weights(w_key, w_query, w_value):
    """One-time weight packing (do at parameter-init time, not per call):
    bf16 cast for MXU-rate matmuls and K|V fusion into a single (C, 2H) weight."""
    wq = jnp.asarray(w_query).astype(jnp.bfloat16)
    wkv = jnp.concatenate(
        [jnp.asarray(w_key), jnp.asarray(w_value)], axis=1).astype(jnp.bfloat16)
    return wq, wkv


def head_forward(x, wq_bf16, wkv_bf16, *, max_q_tile=128, bf16_exp=None):
    """Single-head causal self-attention (eval mode).

    x:          (B, T, C) float32
    wq_bf16:    (C, H)    bfloat16   (from pack_head_weights)
    wkv_bf16:   (C, 2H)   bfloat16   (from pack_head_weights)
    returns:    (B, T, H) float32
    """
    B, T, C = x.shape
    H = wq_bf16.shape[1]
    assert wkv_bf16.shape == (C, 2 * H)

    # Query tile: whole sequence if small, otherwise a 128-row tile
    # (TQ = 256 would make the f32 score matrix alone fill the vreg file).
    if T <= max_q_tile:
        TQ = T
    else:
        assert T % max_q_tile == 0 and max_q_tile % 8 == 0, "T must tile evenly"
        TQ = max_q_tile
    n_q = T // TQ

    if bf16_exp is None:
        bf16_exp = _has_bf16_eup()

    kernel = functools.partial(_head_kernel, bf16_exp=bf16_exp)

    cost = pl.CostEstimate(
        flops=2 * B * (T * C * H            # Q projection (total over tiles)
                       + n_q * T * C * 2 * H  # K|V projection (per query tile)
                       + 2 * T * T * H),      # scores + PV
        transcendentals=B * T * T,
        bytes_accessed=(x.size * x.dtype.itemsize
                        + wq_bf16.size * 2 + wkv_bf16.size * 2
                        + B * T * H * x.dtype.itemsize),
    )

    return pl.pallas_call(
        kernel,
        out_shape=jax.ShapeDtypeStruct((B, T, H), x.dtype),
        grid_spec=pltpu.PrefetchScalarGridSpec(
            num_scalar_prefetch=0,
            grid=(B, n_q),
            in_specs=[
                # x once, full sequence per batch element; block index is
                # constant along the query-tile axis so the pipeline keeps it
                # resident instead of re-fetching it per tile.
                pl.BlockSpec((1, T, C), lambda b, i: (b, 0, 0)),
                pl.BlockSpec((C, H), lambda b, i: (0, 0)),        # W_q
                pl.BlockSpec((C, 2 * H), lambda b, i: (0, 0)),    # W_k | W_v
            ],
            out_specs=pl.BlockSpec((1, TQ, H), lambda b, i: (b, i, 0)),
        ),
        compiler_params=pltpu.CompilerParams(
            dimension_semantics=("parallel", "parallel"),
        ),
        cost_estimate=cost,
    )(x, wq_bf16, wkv_bf16)


def head_reference(x, w_key, w_query, w_value):
    """Pure-JAX f32 reference mirroring the PyTorch forward (eval mode)."""
    B, T, C = x.shape
    k = x @ w_key
    q = x @ w_query
    v = x @ w_value
    wei = (q @ jnp.swapaxes(k, -2, -1)) / math.sqrt(C)
    mask = jnp.tril(jnp.ones((T, T), dtype=bool))
    wei = jnp.where(mask, wei, -jnp.inf)
    wei = jax.nn.softmax(wei, axis=-1)
    return wei @ v


if __name__ == "__main__":
    # Shapes consistent with the module: n_embd=384, head_size=64 (6 heads),
    # seq <= block_size=256.
    B, C, H = 2, 384, 64

    key = jax.random.PRNGKey(0)
    kk, kq, kv, kx1, kx2 = jax.random.split(key, 5)

    bound = 1.0 / math.sqrt(C)
    w_key = jax.random.uniform(kk, (C, H), jnp.float32, -bound, bound)
    w_query = jax.random.uniform(kq, (C, H), jnp.float32, -bound, bound)
    w_value = jax.random.uniform(kv, (C, H), jnp.float32, -bound, bound)

    # One-time weight packing, outside the per-call path.
    wq_b, wkv_b = pack_head_weights(w_key, w_query, w_value)
    wq_b, wkv_b = jax.block_until_ready((wq_b, wkv_b))

    # Case 1: short sequence -> single query tile (TQ == T).
    x1 = jax.random.normal(kx1, (B, 64, C), dtype=jnp.float32)
    out1 = jax.block_until_ready(head_forward(x1, wq_b, wkv_b))
    ref1 = head_reference(x1, w_key, w_query, w_value)
    assert out1.shape == (B, 64, H)
    assert jnp.allclose(out1, ref1, atol=2e-2, rtol=2e-2), "mismatch (T=64)"

    # Case 2: full block_size sequence -> tiled query axis (TQ=128, n_q=2).
    x2 = jax.random.normal(kx2, (B, 256, C), dtype=jnp.float32)
    out2 = jax.block_until_ready(head_forward(x2, wq_b, wkv_b))
    ref2 = head_reference(x2, w_key, w_query, w_value)
    assert out2.shape == (B, 256, H)
    assert jnp.allclose(out2, ref2, atol=2e-2, rtol=2e-2), "mismatch (T=256)"

    print("KERNEL_OK")
</pallas_src>

<mosaic_0001>
module attributes {stable_mosaic.version = 11 : i64} {
  func.func @_head_kernel(%arg0: i32, %arg1: i32, %arg2: memref<1x64x384xf32, #tpu.memory_space<vmem>>, %arg3: memref<384x64xbf16, #tpu.memory_space<vmem>>, %arg4: memref<384x128xbf16, #tpu.memory_space<vmem>>, %arg5: memref<1x64x64xf32, #tpu.memory_space<vmem>>) attributes {dimension_semantics = [#tpu.dimension_semantics<parallel>, #tpu.dimension_semantics<parallel>], iteration_bounds = array<i64: 2, 1>, scalar_prefetch = 0 : i64, scratch_operands = 0 : i64, tpu.core_type = #tpu.core_type<tc>, window_params = [{transform_indices = @transform_0, window_bounds = array<i64: 1, 64, 384>}, {pipeline_mode = #tpu.pipeline_mode<synchronous>, transform_indices = @transform_1, window_bounds = array<i64: 384, 64>}, {pipeline_mode = #tpu.pipeline_mode<synchronous>, transform_indices = @transform_2, window_bounds = array<i64: 384, 128>}, {transform_indices = @transform_3, window_bounds = array<i64: 1, 64, 64>}]} {
    %c64_i32 = arith.constant 64 : i32
    %0 = arith.muli %arg1, %c64_i32 : i32
    %c0 = arith.constant 0 : index
    %c0_0 = arith.constant 0 : index
    %c0_1 = arith.constant 0 : index
    %1 = vector.load %arg2[%c0, %c0_0, %c0_1] : memref<1x64x384xf32, #tpu.memory_space<vmem>>, vector<1x64x384xf32>
    %2 = vector.shape_cast %1 : vector<1x64x384xf32> to vector<64x384xf32>
    %3 = arith.truncf %2 : vector<64x384xf32> to vector<64x384xbf16>
    %c0_2 = arith.constant 0 : index
    %c0_3 = arith.constant 0 : index
    %4 = vector.load %arg4[%c0_2, %c0_3] : memref<384x128xbf16, #tpu.memory_space<vmem>>, vector<384x128xbf16>
    %cst = arith.constant dense<0.000000e+00> : vector<64x128xf32>
    %5 = tpu.matmul %3, %4, %cst {dimension_numbers = #tpu.dot_dimension_numbers<[1], [0], [0], [1], [0, 0, 1, 1], [], []>} : vector<64x384xbf16>, vector<384x128xbf16>, vector<64x128xf32> -> vector<64x128xf32>
    %6 = vector.extract_strided_slice %5 {offsets = [0, 0], sizes = [64, 64], strides = [1, 1]} : vector<64x128xf32> to vector<64x64xf32>
    %7 = arith.truncf %6 : vector<64x64xf32> to vector<64x64xbf16>
    %8 = vector.extract_strided_slice %5 {offsets = [0, 64], sizes = [64, 64], strides = [1, 1]} : vector<64x128xf32> to vector<64x64xf32>
    %9 = arith.truncf %8 : vector<64x64xf32> to vector<64x64xbf16>
    %c0_4 = arith.constant 0 : index
    %c0_5 = arith.constant 0 : index
    %10 = vector.load %arg3[%c0_4, %c0_5] : memref<384x64xbf16, #tpu.memory_space<vmem>>, vector<384x64xbf16>
    %cst_6 = arith.constant dense<0.000000e+00> : vector<64x64xf32>
    %11 = tpu.matmul %3, %10, %cst_6 {dimension_numbers = #tpu.dot_dimension_numbers<[1], [0], [0], [1], [0, 0, 1, 1], [], []>} : vector<64x384xbf16>, vector<384x64xbf16>, vector<64x64xf32> -> vector<64x64xf32>
    %cst_7 = arith.constant 0.0510310382 : f32
    %12 = vector.broadcast %cst_7 : f32 to vector<64x64xf32>
    %13 = arith.mulf %11, %12 : vector<64x64xf32>
    %14 = arith.truncf %13 : vector<64x64xf32> to vector<64x64xbf16>
    %cst_8 = arith.constant dense<0.000000e+00> : vector<64x64xf32>
    %15 = tpu.matmul %14, %7, %cst_8 {dimension_numbers = #tpu.dot_dimension_numbers<[1], [1], [0], [0], [0, 0, 1, 0], [], []>} : vector<64x64xbf16>, vector<64x64xbf16>, vector<64x64xf32> -> vector<64x64xf32>
    %16 = tpu.iota {dimensions = array<i32: 0>} : vector<64x64xi32>
    %17 = vector.broadcast %0 : i32 to vector<64x64xi32>
    %18 = arith.addi %17, %16 : vector<64x64xi32>
    %19 = tpu.iota {dimensions = array<i32: 1>} : vector<64x64xi32>
    %20 = arith.cmpi sle, %19, %18 : vector<64x64xi32>
    %cst_9 = arith.constant 0xFF800000 : f32
    %21 = vector.broadcast %cst_9 : f32 to vector<64x64xf32>
    %22 = arith.select %20, %15, %21 : vector<64x64xi1>, vector<64x64xf32>
    %cst_10 = arith.constant dense<0xFF800000> : vector<64xf32>
    %23 = vector.multi_reduction <maximumf>, %22, %cst_10 [1] : vector<64x64xf32> to vector<64xf32>
    %24 = vector.shape_cast %23 : vector<64xf32> to vector<64x1xf32>
    %25 = vector.broadcast %24 : vector<64x1xf32> to vector<64x64xf32>
    %26 = arith.subf %22, %25 : vector<64x64xf32>
    %27 = math.exp %26 : vector<64x64xf32>
    %cst_11 = arith.constant dense<0.000000e+00> : vector<64xf32>
    %28 = vector.multi_reduction <add>, %27, %cst_11 [1] : vector<64x64xf32> to vector<64xf32>
    %29 = vector.shape_cast %28 : vector<64xf32> to vector<64x1xf32>
    %30 = tpu.reciprocal %29 {approx = true} : vector<64x1xf32> -> vector<64x1xf32>
    %31 = vector.broadcast %30 : vector<64x1xf32> to vector<64x64xf32>
    %32 = arith.mulf %27, %31 : vector<64x64xf32>
    %33 = arith.truncf %32 : vector<64x64xf32> to vector<64x64xbf16>
    %cst_12 = arith.constant dense<0.000000e+00> : vector<64x64xf32>
    %34 = tpu.matmul %33, %9, %cst_12 {dimension_numbers = #tpu.dot_dimension_numbers<[1], [0], [0], [1], [0, 0, 1, 1], [], []>} : vector<64x64xbf16>, vector<64x64xbf16>, vector<64x64xf32> -> vector<64x64xf32>
    %c0_13 = arith.constant 0 : index
    %c0_14 = arith.constant 0 : index
    %c0_15 = arith.constant 0 : index
    %35 = vector.load %arg5[%c0_13, %c0_14, %c0_15] : memref<1x64x64xf32, #tpu.memory_space<vmem>>, vector<1x64x64xf32>
    %36 = vector.shape_cast %35 : vector<1x64x64xf32> to vector<64x64xf32>
    %37 = vector.shape_cast %34 : vector<64x64xf32> to vector<1x64x64xf32>
    tpu.vector_store %arg5[%c0_13, %c0_14, %c0_15], %37 {strides = array<i32>} : memref<1x64x64xf32, #tpu.memory_space<vmem>>, vector<1x64x64xf32>,
    return
  }
  func.func @transform_0(%arg0: i32, %arg1: i32) -> (i32, i32, i32) {
    %c0_i32 = arith.constant 0 : i32
    %c0_i32_0 = arith.constant 0 : i32
    %c0_i32_1 = arith.constant 0 : i32
    return %arg0, %c0_i32, %c0_i32_0 : i32, i32, i32
  }
  func.func @transform_1(%arg0: i32, %arg1: i32) -> (i32, i32) {
    %c0_i32 = arith.constant 0 : i32
    %c0_i32_0 = arith.constant 0 : i32
    %c0_i32_1 = arith.constant 0 : i32
    return %c0_i32, %c0_i32_0 : i32, i32
  }
  func.func @transform_2(%arg0: i32, %arg1: i32) -> (i32, i32) {
    %c0_i32 = arith.constant 0 : i32
    %c0_i32_0 = arith.constant 0 : i32
    %c0_i32_1 = arith.constant 0 : i32
    return %c0_i32, %c0_i32_0 : i32, i32
  }
  func.func @transform_3(%arg0: i32, %arg1: i32) -> (i32, i32, i32) {
    %c0_i32 = arith.constant 0 : i32
    %c0_i32_0 = arith.constant 0 : i32
    return %arg0, %arg1, %c0_i32 : i32, i32, i32
  }
}

</mosaic_0001>

<bundles_post_ra>
// kernel: tpu_custom_call.1
= control target key start
LH: loop header
LB: loop body
LE: loop exit
PB: predicated region body
PF: predicated region fallthrough
CT: control target
= control target key end

     0   :  { %8 = vsyncpa [#allocation3], 0  ;;  %s2335_s0 = inlined_call_operand.hbm [shape: f32[2,64,384], index: 0, kind: input, shape index: {}]   ;;  %s2336_s1 = inlined_call_operand.vmem [shape: bf16[384,64], index: 1, kind: input, shape index: {}]   ;;  %s2337_s2 = inlined_call_operand.vmem [shape: bf16[384,128], index: 2, kind: input, shape index: {}]   ;;  %s2338_s3 = inlined_call_operand.hbm [shape: f32[2,64,64], index: 3, kind: output, shape index: {}]  }
   0x1   :  { %10 = vsyncpa [#allocation3 + $0x1], 0 }
   0x2   :  { %11 = vsyncpa [#allocation4], 0 }
   0x3   :  { %13 = vsyncpa [#allocation4 + $0x1], 0  ;;  %s1885_s12 = smov 0   ;;  %s1887_s13 = smov 0  }
   0x4   :  { %s1889_s14 = smov 0   ;;  %s1891_s15 = smov 0  }
   0x5   :  { %s1893_s16 = smov 0   ;;  %s1895_s17 = smov 0  }
   0x6 LB: > { %s1321_s18 = sadd.s32 4294967295, %s1856_s17   ;;  %s1322_s19 = sadd.s32 4294967294, %s1856_s17   ;;  %s1856_s17 = sphi %s1895_s17, %s19_s17   ;;  %s1852_s16 = sphi %s1893_s16, %s2353_s16   ;;  %s1848_s15 = sphi %s1891_s15, %s2352_s15   ;;  %s1844_s14 = sphi %s1889_s14, %s2351_s14   ;;  %s1840_s13 = sphi %s1887_s13, %s2350_s13   ;;  %s1836_s12 = sphi %s1885_s12, %s2349_s12  }
   0x7   : > { %s31_s20 = sadd.s32 1, %s1852_s16  ;;  %s38_s21 = sadd.s32 1, %s1844_s14 }
   0x8   : > { %p33_p0 = scmp.ge.s32.totalorder %s31_s20, 2  ;;  %p45_p1 = scmp.ne.s32.totalorder %s1844_s14, %s1840_s13 }
   0x9   : > { %p46_p2 = scmp.eq.s32.totalorder %s1856_s17, 0  ;;  %p51_p3 = scmp.ne.s32.totalorder %s1840_s13, %s1836_s12 }
   0xa   : > { %s2355_s20 = smov (%p33_p0, %s31_s20), 0  ;;  %p52_p5 = scmp.eq.s32.totalorder %s1321_s18, 0 }
   0xb   : > { %p1926_p4 = por %p46_p2, %p45_p1  ;;  %s35_s23 = ssub.s32 %s1852_s16, %s2355_s20 }
   0xc   : > { %p119_p6 = scmp.eq.s32.totalorder %s1321_s18, 1  ;;  %p36_p7 = scmp.eq.s32.totalorder %s35_s23, 0 }
   0xd   : > { %p1932_p8 = por %p52_p5, %p51_p3  ;;  %p125_p10 = scmp.eq.s32.totalorder %s1322_s19, 1 }
   0xe   : > { %p1936_p9 = por %p119_p6, %p45_p1  ;;  %p1609_p13 = scmp.lt.s32.totalorder %s1856_s17, 2 }
   0xf   : > { %s1941_s26 = scalar_select %p36_p7, %s1844_s14, %s38_s21  }
  0x10   : > { %s2342_s25 = scalar_select %p1936_p9, 1, 0 }
  0x11   : > { %p1943_p11 = por %p125_p10, %p51_p3  ;;  %s151_s28 = sand.u32 1, %s1844_s14  }
  0x12   : > { %s1594_s29 = smul.u32 192, %s151_s28  ;;  %p1953_p0 = pnand %p1609_p13, %p1926_p4 }
  0x13   : > { %s2343_s27 = scalar_select %p1943_p11, 1, 0 }
  0x14   : > { %s1595_s30 = smul.u32 3072, %s1852_s16  ;;  %s155_s8 = scalar_lea.vmem [#allocation2], %s1594_s29 }
  0x15   : > { %s162_s9 = sshll.u32 %s155_s8, 4  ;;  %s1965_s10 = scalar_lea.sflag [#allocation3], %s151_s28  ;;  %s1962_s9 = int_to_ptr.vmem [resolvable:$true] %s162_s9 }
  0x16   : > { %s1960_s7 = scalar_lea.hbm %s2335_s0, %s1595_s30  ;;  %p1746_p3 = pneg %p1953_p0 }
  0x17   : > { %s1744_s11 = scalar_lea.hbm %s1960_s7, 3072  ;;  %s1749_s21 = scalar_lea.hbm %s2335_s0, 6144 }
  0x18   : > { %p1745_p2 = scmp.ne.s32.totalorder %s1960_s7, %s1744_s11  ;;  %p1750_p6 = scmp.lt.u32.totalorder %s1960_s7, %s2335_s0 }
  0x19   : > { %p1751_p7 = scmp.lt.u32.totalorder %s1749_s21, %s1744_s11  ;;  %p1753_p13 = scmp.lt.u32.totalorder %s1744_s11, %s1960_s7 }
  0x1a   : > { %p1747_p4 = pnand %p1746_p3, %p1745_p2 }
  0x1b   : > { %p1752_p10 = por %p1751_p7, %p1750_p6 }
  0x1c   : > { %p1748_p5 = pneg %p1747_p4 }
  0x1d   : > { %p1754_p12 = por %p1753_p13, %p1752_p10 }
  0x1f   : > { %p1755_p1 = pnand %p1754_p12, %p1748_p5 }
  0x21   : > { %1758 = shalt.err (!%p1755_p1)
}
  0x22   : > { %s1759_s28 = scalar_lea.vmem %s1962_s9, 3072  ;;  %s1858_s29 = smov [#allocation2]  }
  0x23   : > { %p1760_p2 = scmp.ne.s32.totalorder %s1962_s9, %s1759_s28  ;;  %s1764_s30 = sshll.u32 %s1858_s29, 4  ;;  %s1765_s30 = int_to_ptr.vmem [resolvable:$false] %s1764_s30 }
  0x24   : > { %s1766_s5 = scalar_lea.vmem %s1765_s30, 6144  ;;  %p1767_p9 = scmp.lt.s32.totalorder %s1962_s9, %s1765_s30 }
  0x25   : > { %p1762_p4 = pnand %p1760_p2, %p1746_p3  ;;  %p1768_p6 = scmp.lt.s32.totalorder %s1766_s5, %s1759_s28 }
  0x27   : > { %p1763_p11 = pneg %p1762_p4  ;;  %p1769_p7 = por %p1768_p6, %p1767_p9 }
  0x29   : > { %p1770_p10 = pnand %p1769_p7, %p1763_p11 }
  0x2b   : > { %1773 = shalt.err (!%p1770_p10)
}
  0x2c   : > { %s1859_s6 = smov 384   ;;  %s1860_s8 = smov 24  }
  0x2d   : > { %1604 = dma.hbm_to_vmem [thread:$0]  (!%p1953_p0), %s1960_s7, 3072, %s1962_s9, %s1965_s10, %s1859_s6, %s1859_s6, %s1860_s8  }
  0x2e   : > { %p170_p12 = scmp.lt.s32.totalorder %s1856_s17, 3  ;;  %p2345_p1 = scmp.ge.s32.totalorder %s1856_s17, 1 }
  0x30   : > { %p171_p3 = pnand %p2345_p1, %p170_p12 }
  0x31   : > { %s1997_s11 = sand.u32 (!%p171_p3), 1, %s1840_s13  }
  0x32   : > { %174 = sbr.rel (%p171_p3) target bundleno = 1183 (0x49f), region = 32  ;;  %s177_s19 = scalar_lea.sflag (!%p171_p3), [#allocation3], %s1997_s11 }
  0x33   : > { %s1596_s18 = smul.u32 (!%p171_p3), 192, %s1997_s11 }
  0x35   : > { %s2001_s21 = scalar_lea.vmem (!%p171_p3), [#allocation2], %s1596_s18 }
  0x39   : > { %1827 = dma.done.wait (%p1932_p8), %s177_s19, 3072  }
  0x3a   : > { %1829 = vsyncadd (%p1932_p8), %s177_s19, 4294964224  ;;  %v1664_v0 = vld [vmem:[%s2337_s2 + $0x40] sm:$0xff]   ;;  %v1667_v3 = vld [vmem:[%s2337_s2 + $0x48] sm:$0xff]   ;;  %vm902_vm0 = vcmask 523264   ;;  %s1861_s23 = smov 64   ;;  %s1327_s28 = sshll.u32 %s1997_s11, 6 }
  0x3b   : > { %v1665_v1 = vld [vmem:[%s2337_s2] sm:$0xff]   ;;  %1390 = vmatprep.subr.bf16.mxu0 %v1664_v0  ;;  %v1668_v4 = vld [vmem:[%s2337_s2 + $0x8] sm:$0xff]   ;;  %v1670_v6 = vld [vmem:[%s2337_s2 + $0x50] sm:$0xff]   ;;  %s202_s29 = scalar_lea.vmem [#allocation5], %s1327_s28  ;;  %s1389_s30 = sshll.u32 %s1848_s15, 10 }
  0x3c   : > { %v1666_v2 = vld [vmem:[%s2337_s2 + $0x80] sm:$0xff]   ;;  %1391 = vmatpush3.bf16.msra.mxu0 %v1665_v1  ;;  %v1669_v5 = vld [vmem:[%s2337_s2 + $0x88] sm:$0xff]   ;;  %v1671_v7 = vld [vmem:[%s2337_s2 + $0x10] sm:$0xff]   ;;  %s1237_s24 = sshll.u32 %s202_s29, 4  ;;  %s2283_s8 = scalar_lea.hbm %s2338_s3, %s1389_s30  ;;  %s2277_s24 = int_to_ptr.vmem [resolvable:$true] %s1237_s24 }
  0x3d   : > { %1510 = vmatprep.subr.bf16.mxu1 %v1666_v2  ;;  %1392 = vmatprep.subr.bf16.mxu0 %v1667_v3  ;;  %v1672_v8 = vld [vmem:[%s2337_s2 + $0x90] sm:$0xff]   ;;  %v1673_v9 = vld [vmem:[%s2337_s2 + $0x58] sm:$0xff]   ;;  %v1676_v12 = vld [vmem:[%s2337_s2 + $0x60] sm:$0xff]   ;;  %s1222_s15 = scalar_lea.sflag [#allocation4], %s1997_s11  ;;  %s1774_s18 = scalar_lea.vmem %s2277_s24, 1024 }
  0x3e   : > { %1511 = vmatpush3.bf16.msra.mxu1 %v1666_v2  ;;  %v1674_v10 = vld [vmem:[%s2337_s2 + $0x18] sm:$0xff]   ;;  %v1678_v13 = vld [vmem:[%s2337_s2 + $0xa0] sm:$0xff]   ;;  %v1679_v15 = vld [vmem:[%s2337_s2 + $0x68] sm:$0xff]   ;;  %p1775_p8 = scmp.ne.s32.totalorder %s2277_s24, %s1774_s18  ;;  %p2346_p9 = scmp.ne.s32.totalorder %s2342_s25, 0 }
  0x3f   : > { %1512 = vmatprep.subr.bf16.mxu1 %v1669_v5  ;;  %v1675_v11 = vld [vmem:[%s2337_s2 + $0x98] sm:$0xff]   ;;  %v1677_v14 = vld [vmem:[%s2337_s2 + $0x20] sm:$0xff]   ;;  %v1681_v16 = vld [vmem:[%s2337_s2 + $0xa8] sm:$0xff]   ;;  %s1862_s19 = smov [#allocation5]  }
  0x40   : > { %1393 = vmatpush3.bf16.msra.mxu0 %v1668_v4  ;;  %v1680_v17 = vld [vmem:[%s2337_s2 + $0x28] sm:$0xff]   ;;  %v1682_v18 = vld [vmem:[%s2337_s2 + $0x70] sm:$0xff]   ;;  %v1685_v21 = vld [vmem:[%s2337_s2 + $0x78] sm:$0xff]   ;;  %p1776_p11 = pnand %p1775_p8, %p2346_p9 }
  0x41   : > { %1394 = vmatprep.subr.bf16.mxu0 %v1670_v6  ;;  %v1684_v19 = vld [vmem:[%s2337_s2 + $0xb0] sm:$0xff]   ;;  %v207_v22 = vld [vmem:[%s2001_s21 + $0x8] sm:$0xff]  ;;  %v210_v23 = vld [vmem:[%s2001_s21 + $0x20] sm:$0xff] }
  0x42   : > { %1513 = vmatpush3.bf16.msra.mxu1 %v1669_v5  ;;  %v1683_v20 = vld [vmem:[%s2337_s2 + $0x30] sm:$0xff]   ;;  %v1686_v24 = vld [vmem:[%s2337_s2 + $0x38] sm:$0xff]   ;;  %v2081_v26 = vpack.c.bf16 %v210_v23, %v207_v22  ;;  %v206_v27 = vld [vmem:[%s2001_s21] sm:$0xff]  ;;  %p1777_p0 = pneg %p1776_p11 }
  0x43   : > { %1514 = vmatprep.subr.bf16.mxu1 %v1672_v8  ;;  %v1687_v25 = vld [vmem:[%s2337_s2 + $0xb8] sm:$0xff]   ;;  %v208_v28 = vld [vmem:[%s2001_s21 + $0x10] sm:$0xff]  ;;  %v211_v29 = vld [vmem:[%s2001_s21 + $0x28] sm:$0xff] }
  0x44   : > { %1395 = vmatpush3.bf16.msra.mxu0 %v1671_v7  ;;  %466 = vmatprep.mubr.bf16.mxu0 %v2081_v26  ;;  %v209_v30 = vld [vmem:[%s2001_s21 + $0x18] sm:$0xff]  ;;  %v2088_v31 = vpack.c.bf16 %v211_v29, %v208_v28  ;;  %v1688_v32 = vld [vmem:[%s2336_s1 + $0x40] sm:$0xff]   ;;  %v1691_v39 = vld [vmem:[%s2336_s1 + $0x48] sm:$0xff]  }
  0x45   : > { %1396 = vmatprep.subr.bf16.mxu0 %v1673_v9  ;;  %v214_v33 = vld [vmem:[%s2001_s21 + $0x40] sm:$0xff]  ;;  %v217_v34 = vld [vmem:[%s2001_s21 + $0x58] sm:$0xff]  ;;  %v2096_v35 = vpack.c.bf16 %v209_v30, %v206_v27  ;;  %v1692_v41 = vld [vmem:[%s2336_s1 + $0x8] sm:$0xff]  }
  0x46   : > { %1515 = vmatpush3.bf16.msra.mxu1 %v1672_v8  ;;  %1526 = vmatprep.mubr.bf16.mxu1 %v2088_v31  ;;  %v1690_v36 = vld [vmem:[%s2336_s1 + $0x80] sm:$0xff]   ;;  %v2104_v38 = vpack.c.bf16 %v217_v34, %v214_v33  ;;  %v213_v40 = vld [vmem:[%s2001_s21 + $0x38] sm:$0xff]  ;;  %v1693_v42 = vld [vmem:[%s2336_s1 + $0x88] sm:$0xff]  }
  0x47   : > { %1516 = vmatprep.subr.bf16.mxu1 %v1675_v11  ;;  %v1689_v37 = vld [vmem:[%s2336_s1] sm:$0xff]   ;;  %v216_v43 = vld [vmem:[%s2001_s21 + $0x50] sm:$0xff]  ;;  %v215_v46 = vld [vmem:[%s2001_s21 + $0x48] sm:$0xff] }
  0x48   : > { %1397 = vmatpush3.bf16.msra.mxu0 %v1674_v10  ;;  %v2118_v44 = vpack.c.bf16 %v216_v43, %v213_v40  ;;  %v212_v45 = vld [vmem:[%s2001_s21 + $0x30] sm:$0xff]  ;;  %v1697_v51 = vld [vmem:[%s2336_s1 + $0x58] sm:$0xff]   ;;  %v219_v53 = vld [vmem:[%s2001_s21 + $0x68] sm:$0xff] }
  0x49   : > { %1398 = vmatprep.subr.bf16.mxu0 %v1676_v12  ;;  %v1694_v47 = vld [vmem:[%s2336_s1 + $0x50] sm:$0xff]   ;;  %v2130_v49 = vpack.c.bf16 %v215_v46, %v212_v45  ;;  %v1699_v52 = vld [vmem:[%s2336_s1 + $0x98] sm:$0xff]   ;;  %v222_v54 = vld [vmem:[%s2001_s21 + $0x80] sm:$0xff] }
  0x4a   : > { %1517 = vmatpush3.bf16.msra.mxu1 %v1675_v11  ;;  %v1695_v48 = vld [vmem:[%s2336_s1 + $0x10] sm:$0xff]   ;;  %v1698_v55 = vld [vmem:[%s2336_s1 + $0x18] sm:$0xff]   ;;  %v2146_v56 = vpack.c.bf16 %v222_v54, %v219_v53  ;;  %v218_v57 = vld [vmem:[%s2001_s21 + $0x60] sm:$0xff] }
  0x4b   : > { %1518 = vmatprep.subr.bf16.mxu1 %v1678_v13  ;;  %v1696_v50 = vld [vmem:[%s2336_s1 + $0x90] sm:$0xff]   ;;  %v221_v58 = vld [vmem:[%s2001_s21 + $0x78] sm:$0xff]  ;;  %v223_v60 = vld [vmem:[%s2001_s21 + $0x88] sm:$0xff] }
  0x4c   : > { %1399 = vmatpush3.bf16.msra.mxu0 %v1677_v14  ;;  %v220_v59 = vld [vmem:[%s2001_s21 + $0x70] sm:$0xff]  ;;  %v1700_v61 = vld [vmem:[%s2336_s1 + $0x60] sm:$0xff]   ;;  %v229_v0 = vld [vmem:[%s2001_s21 + $0xb8] sm:$0xff]  ;;  %v236_v2 = vpack.c.bf16 %v221_v58, %v218_v57 }
  0x4d   : > { %1400 = vmatprep.subr.bf16.mxu0 %v1679_v15  ;;  %v238_v62 = vpack.c.bf16 %v223_v60, %v220_v59  ;;  %v226_v63 = vld [vmem:[%s2001_s21 + $0xa0] sm:$0xff]  ;;  %v1703_v5 = vld [vmem:[%s2336_s1 + $0x68] sm:$0xff]   ;;  %v225_v6 = vld [vmem:[%s2001_s21 + $0x98] sm:$0xff] }
  0x4e   : > { %1519 = vmatpush3.bf16.msra.mxu1 %v1678_v13  ;;  %v241_v1 = vpack.c.bf16 %v229_v0, %v226_v63  ;;  %v1702_v3 = vld [vmem:[%s2336_s1 + $0xa0] sm:$0xff]   ;;  %v1704_v7 = vld [vmem:[%s2336_s1 + $0x28] sm:$0xff]   ;;  %v228_v9 = vld [vmem:[%s2001_s21 + $0xb0] sm:$0xff] }
  0x4f   : > { %1520 = vmatprep.subr.bf16.mxu1 %v1681_v16  ;;  %v1701_v4 = vld [vmem:[%s2336_s1 + $0x20] sm:$0xff]   ;;  %v1705_v8 = vld [vmem:[%s2336_s1 + $0xa8] sm:$0xff]   ;;  %v240_v10 = vpack.c.bf16 %v228_v9, %v225_v6  ;;  %v224_v11 = vld [vmem:[%s2001_s21 + $0x90] sm:$0xff] }
  0x50   : > { %1401 = vmatpush3.bf16.msra.mxu0 %v1680_v17  ;;  %v227_v12 = vld [vmem:[%s2001_s21 + $0xa8] sm:$0xff]  ;;  %v1706_v13 = vld [vmem:[%s2336_s1 + $0x70] sm:$0xff]   ;;  %v1709_v17 = vld [vmem:[%s2336_s1 + $0x78] sm:$0xff]   ;;  %s1778_s21 = sshll.u32 %s1862_s19, 4  ;;  %s1779_s21 = int_to_ptr.vmem [resolvable:$false] %s1778_s21 }
  0x51   : > { %1402 = vmatprep.subr.bf16.mxu0 %v1682_v18  ;;  %v239_v14 = vpack.c.bf16 %v227_v12, %v224_v11  ;;  %v1708_v15 = vld [vmem:[%s2336_s1 + $0xb0] sm:$0xff]   ;;  %v1711_v18 = vld [vmem:[%s2336_s1 + $0xb8] sm:$0xff]   ;;  %s1780_s4 = scalar_lea.vmem %s1779_s21, 2048  ;;  %p1781_p5 = scmp.lt.s32.totalorder %s2277_s24, %s1779_s21 }
  0x52   : > { %1521 = vmatpush3.bf16.msra.mxu1 %v1681_v16  ;;  %v1707_v16 = vld [vmem:[%s2336_s1 + $0x30] sm:$0xff]   ;;  %p1782_p13 = scmp.lt.s32.totalorder %s1780_s4, %s1774_s18 }
  0x53   : > { %1522 = vmatprep.subr.bf16.mxu1 %v1684_v19 }
  0x54   : > { %1403 = vmatpush3.bf16.msra.mxu0 %v1683_v20  ;;  %p1783_p2 = por %p1782_p13, %p1781_p5 }
  0x55   : > { %1404 = vmatprep.subr.bf16.mxu0 %v1685_v21 }
  0x56   : > { %1523 = vmatpush3.bf16.msra.mxu1 %v1684_v19  ;;  %v1710_v19 = vld [vmem:[%s2336_s1 + $0x38] sm:$0xff]   ;;  %p1784_p4 = pnand %p1783_p2, %p1777_p0 }
  0x57   : > { %1524 = vmatprep.subr.bf16.mxu1 %v1687_v25 }
  0x58   : > { %1405 = vmatpush3.bf16.msra.mxu0 %v1686_v24 }
  0x59   : > { %1442 = vmatprep.subr.bf16.mxu0 %v1688_v32 }
  0x5a   : > { %1525 = vmatpush3.bf16.msra.mxu1 %v1687_v25 }
  0x5b   : > { %467 = vmatmul.mubr.bf16.vlgmr.msra.gmra.mrb[0].mxu0 %v2096_v35  ;;  %1534 = vmatprep.subr.bf16.mxu1 %v1690_v36 }
  0x5c   : > { %1443 = vmatpush3.bf16.msra.mxu0 %v1689_v37  ;;  %474 = vmatprep.mubr.bf16.mxu0 %v2118_v44 }
  0x5d   : > { %1527 = vmatmul.mubr.bf16.vlgmr.msra.gmra.mrb[0].mxu1 %v2104_v38  ;;  %1444 = vmatprep.subr.bf16.mxu0 %v1691_v39 }
  0x5e   : > { %1535 = vmatpush3.bf16.msra.mxu1 %v1690_v36  ;;  %1530 = vmatprep.mubr.bf16.mxu1 %v238_v62 }
  0x5f   : > { %1536 = vmatprep.subr.bf16.mxu1 %v1693_v42 }
  0x60   : > { %1445 = vmatpush3.bf16.msra.mxu0 %v1692_v41 }
  0x61   : > { %1446 = vmatprep.subr.bf16.mxu0 %v1694_v47 }
  0x62   : > { %1537 = vmatpush3.bf16.msra.mxu1 %v1693_v42 }
  0x63   : > { %475 = vmatmul.mubr.bf16.gmra.mrb[4].mxu0 %v2130_v49  ;;  %1538 = vmatprep.subr.bf16.mxu1 %v1696_v50 }
  0x64   : > { %1447 = vmatpush3.bf16.msra.mxu0 %v1695_v48  ;;  %482 = vmatprep.mubr.bf16.mxu0 %v2146_v56 }
  0x65   : > { %1448 = vmatprep.subr.bf16.mxu0 %v1697_v51  ;;  %1531 = vmatmul.mubr.bf16.gmra.mrb[4].mxu1 %v241_v1 }
  0x66   : > { %1539 = vmatpush3.bf16.msra.mxu1 %v1696_v50  ;;  %1550 = vmatprep.mubr.bf16.mxu1 %v2088_v31 }
  0x67   : > { %1540 = vmatprep.subr.bf16.mxu1 %v1699_v52 }
  0x68   : > { %1449 = vmatpush3.bf16.msra.mxu0 %v1698_v55 }
  0x69   : > { %1450 = vmatprep.subr.bf16.mxu0 %v1700_v61 }
  0x6a   : > { %1541 = vmatpush3.bf16.msra.mxu1 %v1699_v52 }
  0x6b   : > { %483 = vmatmul.mubr.bf16.gmra.mrb[8].mxu0 %v236_v2  ;;  %1542 = vmatprep.subr.bf16.mxu1 %v1702_v3 }
  0x6c   : > { %1451 = vmatpush3.bf16.msra.mxu0 %v1701_v4  ;;  %490 = vmatprep.mubr.bf16.mxu0 %v240_v10 }
  0x6d   : > { %1452 = vmatprep.subr.bf16.mxu0 %v1703_v5 }
  0x6e   : > { %1543 = vmatpush3.bf16.msra.mxu1 %v1702_v3 }
  0x6f   : > { %1544 = vmatprep.subr.bf16.mxu1 %v1705_v8 }
  0x70   : > { %1453 = vmatpush3.bf16.msra.mxu0 %v1704_v7 }
  0x71   : > { %1454 = vmatprep.subr.bf16.mxu0 %v1706_v13 }
  0x72   : > { %1545 = vmatpush3.bf16.msra.mxu1 %v1705_v8 }
  0x73   : > { %491 = vmatmul.mubr.bf16.gmra.mrb[12].mxu0 %v239_v14  ;;  %1546 = vmatprep.subr.bf16.mxu1 %v1708_v15 }
  0x74   : > { %1455 = vmatpush3.bf16.msra.mxu0 %v1707_v16  ;;  %792 = vmatprep.mubr.bf16.mxu0 %v2081_v26 }
  0x75   : > { %1456 = vmatprep.subr.bf16.mxu0 %v1709_v17 }
  0x76   : > { %1547 = vmatpush3.bf16.msra.mxu1 %v1708_v15 }
  0x77   : > { %1548 = vmatprep.subr.bf16.mxu1 %v1711_v18 }
  0x78   : > { %1457 = vmatpush3.bf16.msra.mxu0 %v1710_v19 }
  0x7a   : > { %1549 = vmatpush3.bf16.msra.mxu1 %v1711_v18 }
  0x7b   : > { %793 = vmatmul.mubr.bf16.vlgmr.msra.gmra.mrb[16].mxu0 %v2096_v35 }
  0x7c   : > { %800 = vmatprep.mubr.bf16.mxu0 %v2118_v44 }
  0x7d   : > { %1551 = vmatmul.mubr.bf16.vlgmr.msra.gmra.mrb[8].mxu1 %v2104_v38 }
  0x7e   : > { %1554 = vmatprep.mubr.bf16.mxu1 %v238_v62 }
  0x83   : > { %801 = vmatmul.mubr.bf16.gmra.mrb[20].mxu0 %v2130_v49 }
  0x84   : > { %808 = vmatprep.mubr.bf16.mxu0 %v2146_v56 }
  0x85   : > { %1555 = vmatmul.mubr.bf16.gmra.mrb[12].mxu1 %v241_v1 }
  0x8b   : > { %809 = vmatmul.mubr.bf16.gmra.mrb[24].mxu0 %v236_v2 }
  0x8c   : > { %816 = vmatprep.mubr.bf16.mxu0 %v240_v10 }
  0x93   : > { %817 = vmatmul.mubr.bf16.gmra.mrb[28].mxu0 %v239_v14 }
 0x12e   : > { %v1406_v20 = vpop.f32.mrb[0].mxu0 }
 0x12f   : > { %v1407_v21 = vpop.f32.mrb[1].mxu0 }
 0x130   : > { %v1408_v22 = vadd.f32 %v1407_v21, %v1406_v20  ;;  %v1409_v23 = vpop.f32.mrb[2].mxu0  ;;  %v1528_v24 = vpop.f32.mrb[0].mxu1 }
 0x131   : > { %v1410_v25 = vpop.f32.mrb[3].mxu0  ;;  %v533_v26 = vpop.f32.mrb[1].mxu1 }
 0x132   : > { %v1411_v27 = vadd.f32 %v1410_v25, %v1409_v23  ;;  %v534_v28 = vadd.f32 %v1408_v22, %v533_v26  ;;  %v1529_v29 = vpop.f32.mrb[2].mxu1 }
 0x133   : > { %v536_v30 = vpop.f32.mrb[3].mxu1 }
 0x134   : > { %v537_v31 = vadd.f32 %v1411_v27, %v536_v30 }
 0x136   : > { %v2203_v32 = vpack.c.bf16 %v537_v31, %v534_v28  ;;  %v1412_v33 = vpop.f32.mrb[4].mxu0 }
 0x137   : > { %v1413_v34 = vpop.f32.mrb[5].mxu0 }
 0x138   : > { %v1414_v35 = vadd.f32 %v1413_v34, %v1412_v33  ;;  %v1415_v36 = vpop.f32.mrb[6].mxu0  ;;  %1590 = vmatprep.subr.msk.bf16.mxu0 %vm902_vm0, %v2203_v32  ;;  %v916_v37 = vsel %vm902_vm0, %v2203_v32, 0  ;;  %v1532_v41 = vpop.f32.mrb[4].mxu1 }
 0x139   : > { %v1416_v38 = vpop.f32.mrb[7].mxu0  ;;  %1559 = vmatpush3.bf16.xpose.msra.mxu0 %v916_v37  ;;  %v549_v43 = vpop.f32.mrb[5].mxu1 }
 0x13a   : > { %v542_v39 = vadd.f32 %v1528_v24, %v1414_v35  ;;  %v1417_v40 = vadd.f32 %v1416_v38, %v1415_v36  ;;  %v1533_v44 = vpop.f32.mrb[6].mxu1 }
 0x13b   : > { %v552_v47 = vpop.f32.mrb[7].mxu1 }
 0x13c   : > { %v545_v42 = vadd.f32 %v1529_v29, %v1417_v40 }
 0x13e   : > { %v2209_v45 = vpack.c.bf16 %v545_v42, %v542_v39  ;;  %v1418_v46 = vpop.f32.mrb[8].mxu0 }
 0x13f   : > { %v1419_v48 = vpop.f32.mrb[9].mxu0 }
 0x140   : > { %v1420_v49 = vadd.f32 %v1419_v48, %v1418_v46  ;;  %v1421_v50 = vpop.f32.mrb[10].mxu0  ;;  %1591 = vmatprep.subr.msk.bf16.mxu0 %vm902_vm0, %v2209_v45  ;;  %v919_v51 = vsel %vm902_vm0, %v2209_v45, 0 }
 0x141   : > { %v1422_v52 = vpop.f32.mrb[11].mxu0  ;;  %1561 = vmatpush3.bf16.xpose.msra.mxu0 %v919_v51 }
 0x142   : > { %v1423_v53 = vadd.f32 %v1422_v52, %v1421_v50  ;;  %v550_v54 = vadd.f32 %v1420_v49, %v549_v43 }
 0x144   : > { %v553_v55 = vadd.f32 %v1423_v53, %v552_v47 }
 0x146   : > { %v2215_v56 = vpack.c.bf16 %v553_v55, %v550_v54  ;;  %v1424_v57 = vpop.f32.mrb[12].mxu0 }
 0x147   : > { %v1425_v58 = vpop.f32.mrb[13].mxu0 }
 0x148   : > { %v1426_v59 = vadd.f32 %v1425_v58, %v1424_v57  ;;  %v1427_v60 = vpop.f32.mrb[14].mxu0  ;;  %1592 = vmatprep.subr.msk.bf16.mxu0 %vm902_vm0, %v2215_v56  ;;  %v922_v61 = vsel %vm902_vm0, %v2215_v56, 0 }
 0x149   : > { %v1428_v62 = vpop.f32.mrb[15].mxu0  ;;  %1563 = vmatpush3.bf16.xpose.msra.mxu0 %v922_v61 }
 0x14a   : > { %v558_v63 = vadd.f32 %v1532_v41, %v1426_v59  ;;  %v1429_v0 = vadd.f32 %v1428_v62, %v1427_v60  ;;  %v992_v59 = vlaneseq }
 0x14c   : > { %v561_v1 = vadd.f32 %v1533_v44, %v1429_v0  ;;  %v993_v60 = vshrl.u32 %v992_v59, 7  ;;  %v1011_v62 = vand.u32 127, %v992_v59 }
 0x14e   : > { %v2221_v2 = vpack.c.bf16 %v561_v1, %v558_v63  ;;  %v1458_v3 = vpop.f32.mrb[16].mxu0  ;;  %v995_v61 = vadd.s32 16, %v993_v60  ;;  %v996_v63 = vadd.s32 24, %v993_v60  ;;  %v994_v0 = vadd.s32 8, %v993_v60 }
 0x14f   : > { %v1459_v4 = vpop.f32.mrb[17].mxu0  ;;  %vm1012_vm2 = vcmp.le.s32.totalorder %v1011_v62, %v993_v60 }
 0x150   : > { %v1460_v5 = vadd.f32 %v1459_v4, %v1458_v3  ;;  %v1461_v6 = vpop.f32.mrb[18].mxu0  ;;  %v1552_v7 = vpop.f32.mrb[8].mxu1  ;;  %1593 = vmatprep.subr.msk.bf16.mxu0 %vm902_vm0, %v2221_v2  ;;  %v925_v8 = vsel %vm902_vm0, %v2221_v2, 0  ;;  %vm1014_vm1 = vcmp.le.s32.totalorder %v1011_v62, %v995_v61  ;;  %vm1015_vm3 = vcmp.le.s32.totalorder %v1011_v62, %v996_v63 }
 0x151   : > { %v1462_v9 = vpop.f32.mrb[19].mxu0  ;;  %v859_v10 = vpop.f32.mrb[9].mxu1  ;;  %1565 = vmatpush3.bf16.xpose.msra.mxu0 %v925_v8  ;;  %vm1013_vm4 = vcmp.le.s32.totalorder %v1011_v62, %v994_v0 }
 0x152   : > { %v1463_v11 = vadd.f32 %v1462_v9, %v1461_v6  ;;  %v860_v12 = vadd.f32 %v1460_v5, %v859_v10  ;;  %v1553_v13 = vpop.f32.mrb[10].mxu1 }
 0x153   : > { %v862_v14 = vpop.f32.mrb[11].mxu1 }
 0x154   : > { %v863_v15 = vadd.f32 %v1463_v11, %v862_v14  ;;  %v890_v16 = vmul.f32 0.05103104, %v860_v12  ;;  %v999_v14 = vadd.s32 48, %v993_v60 }
 0x156   : > { %v891_v17 = vmul.f32 0.05103104, %v863_v15  ;;  %v1464_v18 = vpop.f32.mrb[20].mxu0  ;;  %v997_v15 = vadd.s32 32, %v993_v60  ;;  %vm1018_vm5 = vcmp.le.s32.totalorder %v1011_v62, %v999_v14 }
 0x157   : > { %v1465_v19 = vpop.f32.mrb[21].mxu0 }
 0x158   : > { %v898_v20 = vpack.c.bf16 %v891_v17, %v890_v16  ;;  %v1466_v21 = vadd.f32 %v1465_v19, %v1464_v18  ;;  %v1467_v22 = vpop.f32.mrb[22].mxu0  ;;  %v1556_v23 = vpop.f32.mrb[12].mxu1  ;;  %v1000_v16 = vadd.s32 56, %v993_v60  ;;  %v998_v17 = vadd.s32 40, %v993_v60 }
 0x159   : > { %v1468_v24 = vpop.f32.mrb[23].mxu0  ;;  %v875_v25 = vpop.f32.mrb[13].mxu1  ;;  %vm1016_vm6 = vcmp.le.s32.totalorder %v1011_v62, %v997_v15 }
 0x15a   : > { %v868_v26 = vadd.f32 %v1552_v7, %v1466_v21  ;;  %v1469_v27 = vadd.f32 %v1468_v24, %v1467_v22  ;;  %1566 = vmatprep.mubr.msk.bf16.mxu0 %vm902_vm0, %v898_v20  ;;  %v1557_v28 = vpop.f32.mrb[14].mxu1  ;;  %vm1019_vm7 = vcmp.le.s32.totalorder %v1011_v62, %v1000_v16  ;;  %vm1017_vm8 = vcmp.le.s32.totalorder %v1011_v62, %v998_v17 }
 0x15b   : > { %v878_v29 = vpop.f32.mrb[15].mxu1 }
 0x15c   : > { %v871_v30 = vadd.f32 %v1553_v13, %v1469_v27  ;;  %v892_v31 = vmul.f32 0.05103104, %v868_v26 }
 0x15e   : > { %v893_v33 = vmul.f32 0.05103104, %v871_v30  ;;  %v1470_v34 = vpop.f32.mrb[24].mxu0 }
 0x15f   : > { %v1471_v35 = vpop.f32.mrb[25].mxu0 }
 0x160   : > { %v899_v36 = vpack.c.bf16 %v893_v33, %v892_v31  ;;  %v1472_v37 = vadd.f32 %v1471_v35, %v1470_v34  ;;  %v1473_v38 = vpop.f32.mrb[26].mxu0 }
 0x161   : > { %v1474_v39 = vpop.f32.mrb[27].mxu0 }
 0x162   : > { %1567 = vmatmul.mubr.msk.bf16.vlgmr.msra.gmra.mrb[32].mxu0 %vm902_vm0, %v899_v36  ;;  %v1475_v40 = vadd.f32 %v1474_v39, %v1473_v38  ;;  %v876_v41 = vadd.f32 %v1472_v37, %v875_v25 }
 0x164   : > { %v894_v42 = vmul.f32 0.05103104, %v876_v41  ;;  %v879_v43 = vadd.f32 %v1475_v40, %v878_v29 }
 0x166   : > { %v1476_v44 = vpop.f32.mrb[28].mxu0  ;;  %v895_v46 = vmul.f32 0.05103104, %v879_v43 }
 0x167   : > { %v1477_v47 = vpop.f32.mrb[29].mxu0 }
 0x168   : > { %v1478_v48 = vadd.f32 %v1477_v47, %v1476_v44  ;;  %v1479_v49 = vpop.f32.mrb[30].mxu0  ;;  %v900_v50 = vpack.c.bf16 %v895_v46, %v894_v42 }
 0x169   : > { %v1480_v51 = vpop.f32.mrb[31].mxu0 }
 0x16a   : > { %v884_v52 = vadd.f32 %v1556_v23, %v1478_v48  ;;  %v1481_v53 = vadd.f32 %v1480_v51, %v1479_v49  ;;  %1570 = vmatprep.mubr.msk.bf16.mxu0 %vm902_vm0, %v900_v50 }
 0x16c   : > { %v896_v54 = vmul.f32 0.05103104, %v884_v52  ;;  %v887_v55 = vadd.f32 %v1557_v28, %v1481_v53 }
 0x16e   : > { %v897_v57 = vmul.f32 0.05103104, %v887_v55 }
 0x170   : > { %v901_v58 = vpack.c.bf16 %v897_v57, %v896_v54 }
 0x172   : > { %1571 = vmatmul.mubr.msk.bf16.gmra.mrb[36].mxu0 %vm902_vm0, %v901_v58 }
 0x235   : > { %v1568_v1 = vpop.f32.mrb[32].mxu0 }
 0x236   : > { %v1022_v3 = vsel %vm1014_vm1, %v1568_v1, -inf  ;;  %v961_v4 = vpop.f32.mrb[33].mxu0 }
 0x237   : > { %v1020_v5 = vsel %vm1012_vm2, %v961_v4, -inf  ;;  %v1569_v6 = vpop.f32.mrb[34].mxu0  ;;  %v1034_v7 = vsel %vm902_vm0, %v1022_v3, -inf }
 0x238   : > { %v1023_v8 = vsel %vm1015_vm3, %v1569_v6, -inf  ;;  %1035 = vmax.xlane.f32.xlu1 %v1034_v7  ;;  %v964_v9 = vpop.f32.mrb[35].mxu0  ;;  %v1028_v10 = vsel %vm902_vm0, %v1020_v5, -inf }
 0x239   : > { %v1021_v11 = vsel %vm1013_vm4, %v964_v9, -inf  ;;  %1029 = vmax.xlane.f32.xlu0 %v1028_v10  ;;  %v1037_v12 = vsel %vm902_vm0, %v1023_v8, -inf }
 0x23a   : > { %v1031_v13 = vsel %vm902_vm0, %v1021_v11, -inf }
 0x23c   : > { %1038 = vmax.xlane.f32.xlu1 %v1037_v12 }
 0x23d   : > { %1032 = vmax.xlane.f32.xlu0 %v1031_v13 }
 0x245   : > { %v1572_v18 = vpop.f32.mrb[36].mxu0 }
 0x246   : > { %v977_v19 = vpop.f32.mrb[37].mxu0  ;;  %v1026_v20 = vsel %vm1018_vm5, %v1572_v18, -inf }
 0x247   : > { %v1024_v21 = vsel %vm1016_vm6, %v977_v19, -inf  ;;  %v1573_v22 = vpop.f32.mrb[38].mxu0  ;;  %v1046_v28 = vsel %vm902_vm0, %v1026_v20, -inf }
 0x248   : > { %v980_v23 = vpop.f32.mrb[39].mxu0  ;;  %v1040_v24 = vsel %vm902_vm0, %v1024_v21, -inf  ;;  %v1027_v25 = vsel %vm1019_vm7, %v1573_v22, -inf }
 0x249   : > { %v1025_v26 = vsel %vm1017_vm8, %v980_v23, -inf  ;;  %1041 = vmax.xlane.f32.xlu0 %v1040_v24  ;;  %v1049_v29 = vsel %vm902_vm0, %v1027_v25, -inf }
 0x24a   : > { %v1043_v27 = vsel %vm902_vm0, %v1025_v26, -inf }
 0x24b   : > { %1044 = vmax.xlane.f32.xlu1 %v1043_v27 }
 0x24d   : > { %1047 = vmax.xlane.f32.xlu0 %v1046_v28 }
 0x24f   : > { %1050 = vmax.xlane.f32.xlu1 %v1049_v29 }
 0x2c5   : > { %v1036_v30 = vpop.xlane.xlu1 %1035 }
 0x2c6   : > { %v1054_v31 = vsub.f32 %v1022_v3, %v1036_v30  ;;  %v1030_v33 = vpop.xlane.xlu0 %1029 }
 0x2c7   : > { %v1052_v34 = vsub.f32 %v1020_v5, %v1030_v33 }
 0x2c8   : > { %v1064_v35 = vmul.f32 1.442695, %v1054_v31 }
 0x2c9   : > { %v1060_v36 = vmul.f32 1.442695, %v1052_v34  ;;  %v1039_v37 = vpop.xlane.xlu1 %1038 }
 0x2ca   : > { %1712 = vpow2.f32 %v1064_v35  ;;  %v1055_v38 = vsub.f32 %v1023_v8, %v1039_v37  ;;  %v1033_v39 = vpop.xlane.xlu0 %1032 }
 0x2cb   : > { %v1053_v40 = vsub.f32 %v1021_v11, %v1033_v39  ;;  %1714 = vpow2.f32 %v1060_v36 }
 0x2cc   : > { %v1066_v41 = vmul.f32 1.442695, %v1055_v38 }
 0x2cd   : > { %v1062_v42 = vmul.f32 1.442695, %v1053_v40 }
 0x2ce   : > { %1716 = vpow2.f32 %v1066_v41 }
 0x2cf   : > { %1718 = vpow2.f32 %v1062_v42 }
 0x2d4   : > { %v2239_v43 = vpop.eup %1712 }
 0x2d5   : > { %v1082_v44 = vsel %vm902_vm0, %v2239_v43, 0.0  ;;  %v1715_v46 = vpop.eup %1714 }
 0x2d6   : > { %1083 = vadd.xlane.f32.xlu0 %v1082_v44  ;;  %v1042_v47 = vpop.xlane.xlu0 %1041  ;;  %v1076_v50 = vsel %vm902_vm0, %v1715_v46, 0.0 }
 0x2d7   : > { %v1056_v49 = vsub.f32 %v1024_v21, %v1042_v47 }
 0x2d8   : > { %v2243_v48 = vpop.eup %1716  ;;  %v1045_v63 = vpop.xlane.xlu1 %1044 }
 0x2d9   : > { %v1085_v51 = vsel %vm902_vm0, %v2243_v48, 0.0  ;;  %v1719_v52 = vpop.eup %1718  ;;  %v1068_v55 = vmul.f32 1.442695, %v1056_v49  ;;  %v1057_v3 = vsub.f32 %v1025_v26, %v1045_v63 }
 0x2da   : > { %1077 = vadd.xlane.f32.xlu0 %v1076_v50  ;;  %v1048_v53 = vpop.xlane.xlu0 %1047  ;;  %1086 = vadd.xlane.f32.xlu1 %v1085_v51  ;;  %v1079_v58 = vsel %vm902_vm0, %v1719_v52, 0.0 }
 0x2db   : > { %v1058_v54 = vsub.f32 %v1026_v20, %v1048_v53  ;;  %v1070_v5 = vmul.f32 1.442695, %v1057_v3 }
 0x2dc   : > { %v1051_v0 = vpop.xlane.xlu1 %1050 }
 0x2dd   : > { %v1072_v57 = vmul.f32 1.442695, %v1058_v54  ;;  %v1059_v1 = vsub.f32 %v1027_v25, %v1051_v0 }
 0x2de   : > { %1080 = vadd.xlane.f32.xlu1 %v1079_v58 }
 0x2df   : > { %1720 = vpow2.f32 %v1072_v57  ;;  %v1074_v4 = vmul.f32 1.442695, %v1059_v1 }
 0x2e0   : > { %1722 = vpow2.f32 %v1068_v55 }
 0x2e1   : > { %1724 = vpow2.f32 %v1074_v4 }
 0x2e2   : > { %1726 = vpow2.f32 %v1070_v5 }
 0x2e9   : > { %v2249_v59 = vpop.eup %1720 }
 0x2ea   : > { %v1094_v60 = vsel %vm902_vm0, %v2249_v59, 0.0  ;;  %v2253_v61 = vpop.eup %1722 }
 0x2eb   : > { %1095 = vadd.xlane.f32.xlu0 %v1094_v60  ;;  %v1088_v62 = vsel %vm902_vm0, %v2253_v61, 0.0  ;;  %v1725_v6 = vpop.eup %1724 }
 0x2ec   : > { %v1097_v7 = vsel %vm902_vm0, %v1725_v6, 0.0  ;;  %v1727_v8 = vpop.eup %1726 }
 0x2ed   : > { %v1091_v9 = vsel %vm902_vm0, %v1727_v8, 0.0 }
 0x2ef   : > { %1089 = vadd.xlane.f32.xlu0 %v1088_v62  ;;  %1126 = vrot.lane.b32.xlu1 %v2209_v45, %s1861_s23 }
 0x2f3   : > { %1128 = vrot.lane.b32.xlu1 %v2215_v56, %s1861_s23 }
 0x305   : > { %1124 = vrot.lane.b32.xlu0 %v2203_v32, %s1861_s23 }
 0x317   : > { %1098 = vadd.xlane.f32.xlu1 %v1097_v7 }
 0x31b   : > { %1092 = vadd.xlane.f32.xlu1 %v1091_v9 }
 0x32c   : > { %1130 = vrot.lane.b32.xlu1 %v2221_v2, %s1861_s23 }
 0x363   : > { %v1084_v45 = vpop.xlane.xlu0 %1083 }
 0x367   : > { %v1078_v56 = vpop.xlane.xlu0 %1077  ;;  %v1087_v10 = vpop.xlane.xlu1 %1086 }
 0x368   : > { %1728 = vrcp.f32 %v1078_v56 }
 0x36b   : > { %v1081_v11 = vpop.xlane.xlu1 %1080 }
 0x36c   : > { %1730 = vrcp.f32 %v1081_v11 }
 0x36d   : > { %1732 = vrcp.f32 %v1087_v10 }
 0x36e   : > { %1734 = vrcp.f32 %v1084_v45 }
 0x36f   : > { %v1127_v18 = vpop.permute.xlu1 %1126 }
 0x372   : > { %v1729_v32 = vpop.eup %1728 }
 0x373   : > { %v1108_v13 = vmul.f32 %v1729_v32, %v1715_v46  ;;  %v1129_v2 = vpop.permute.xlu1 %1128 }
 0x376   : > { %v1731_v12 = vpop.eup %1730 }
 0x377   : > { %v1109_v14 = vmul.f32 %v1731_v12, %v1719_v52  ;;  %v1733_v21 = vpop.eup %1732 }
 0x378   : > { %v1096_v15 = vpop.xlane.xlu0 %1095  ;;  %v1735_v23 = vpop.eup %1734  ;;  %v1111_v24 = vmul.f32 %v1733_v21, %v2243_v48 }
 0x379   : > { %v1116_v16 = vpack.c.bf16 %v1109_v14, %v1108_v13  ;;  %v1110_v26 = vmul.f32 %v1735_v23, %v2239_v43 }
 0x37b   : > { %1582 = vmatprep.mubr.msk.bf16.mxu1 %vm902_vm0, %v1116_v16  ;;  %v1117_v27 = vpack.c.bf16 %v1111_v24, %v1110_v26 }
 0x37c   : > { %v1090_v17 = vpop.xlane.xlu0 %1089 }
 0x380   : > { %v1125_v19 = vpop.permute.xlu0 %1124 }
 0x381   : > { %1574 = vmatprep.subr.bf16.mxu1 %v1125_v19 }
 0x382   : > { %1575 = vmatpush3.bf16.msra.mxu1 %v1125_v19 }
 0x383   : > { %1576 = vmatprep.subr.bf16.mxu1 %v1127_v18 }
 0x386   : > { %1577 = vmatpush3.bf16.msra.mxu1 %v1127_v18 }
 0x387   : > { %1578 = vmatprep.subr.bf16.mxu1 %v1129_v2 }
 0x38a   : > { %1579 = vmatpush3.bf16.msra.mxu1 %v1129_v2 }
 0x3a4   : > { %v1099_v20 = vpop.xlane.xlu1 %1098 }
 0x3a5   : > { %1736 = vrcp.f32 %v1099_v20 }
 0x3a6   : > { %1738 = vrcp.f32 %v1090_v17 }
 0x3a7   : > { %1740 = vrcp.f32 %v1096_v15 }
 0x3a8   : > { %v1093_v22 = vpop.xlane.xlu1 %1092 }
 0x3a9   : > { %1742 = vrcp.f32 %v1093_v22 }
 0x3ac   : > { %v1131_v25 = vpop.permute.xlu1 %1130 }
 0x3ad   : > { %1580 = vmatprep.subr.bf16.mxu1 %v1131_v25 }
 0x3ae   : > { %1581 = vmatpush3.bf16.msra.mxu1 %v1131_v25 }
 0x3af   : > { %v1737_v28 = vpop.eup %1736 }
 0x3b0   : > { %v1739_v29 = vpop.eup %1738  ;;  %v1115_v33 = vmul.f32 %v1737_v28, %v1725_v6 }
 0x3b1   : > { %1583 = vmatmul.mubr.msk.bf16.vlgmr.msra.gmra.mrb[16].mxu1 %vm902_vm0, %v1117_v27  ;;  %v1741_v30 = vpop.eup %1740  ;;  %v1112_v34 = vmul.f32 %v1739_v29, %v2253_v61 }
 0x3b2   : > { %v1114_v36 = vmul.f32 %v1741_v30, %v2249_v59 }
 0x3b3   : > { %v1743_v31 = vpop.eup %1742 }
 0x3b4   : > { %v1113_v35 = vmul.f32 %v1743_v31, %v1727_v8  ;;  %v1119_v38 = vpack.c.bf16 %v1115_v33, %v1114_v36 }
 0x3b6   : > { %v1118_v37 = vpack.c.bf16 %v1113_v35, %v1112_v34 }
 0x3b8   : > { %1586 = vmatprep.mubr.msk.bf16.mxu1 %vm902_vm0, %v1118_v37 }
 0x3b9   : > { %1587 = vmatmul.mubr.msk.bf16.gmra.mrb[20].mxu1 %vm902_vm0, %v1119_v38 }
 0x484   : > { %v1584_v39 = vpop.f32.mrb[16].mxu1 }
 0x485   : > { %1215 = vst.msk [vmem:[%s202_s29 + $0x10] sm:$0xff] %vm902_vm0, %v1584_v39  ;;  %v1182_v40 = vpop.f32.mrb[17].mxu1 }
 0x486   : > { %1213 = vst.msk [vmem:[%s202_s29] sm:$0xff] %vm902_vm0, %v1182_v40  ;;  %v1585_v41 = vpop.f32.mrb[18].mxu1 }
 0x487   : > { %1216 = vst.msk [vmem:[%s202_s29 + $0x18] sm:$0xff] %vm902_vm0, %v1585_v41  ;;  %v1185_v42 = vpop.f32.mrb[19].mxu1 }
 0x488   : > { %1214 = vst.msk [vmem:[%s202_s29 + $0x8] sm:$0xff] %vm902_vm0, %v1185_v42 }
 0x48c   : > { %v1588_v43 = vpop.f32.mrb[20].mxu1 }
 0x48d   : > { %1219 = vst.msk [vmem:[%s202_s29 + $0x30] sm:$0xff] %vm902_vm0, %v1588_v43  ;;  %v1198_v44 = vpop.f32.mrb[21].mxu1 }
 0x48e   : > { %1217 = vst.msk [vmem:[%s202_s29 + $0x20] sm:$0xff] %vm902_vm0, %v1198_v44  ;;  %v1589_v46 = vpop.f32.mrb[22].mxu1 }
 0x48f   : > { %1220 = vst.msk [vmem:[%s202_s29 + $0x38] sm:$0xff] %vm902_vm0, %v1589_v46  ;;  %v1201_v47 = vpop.f32.mrb[23].mxu1 }
 0x490   : > { %1218 = vst.msk [vmem:[%s202_s29 + $0x28] sm:$0xff] %vm902_vm0, %v1201_v47 }
 0x491   : > { %1787 = shalt.err (!%p1784_p4)
}
 0x492   : > { %s1788_s7 = scalar_lea.hbm %s2283_s8, 1024  ;;  %s1792_s22 = scalar_lea.hbm %s2338_s3, 2048 }
 0x493   : > { %p1789_p6 = scmp.ne.s32.totalorder %s2283_s8, %s1788_s7  ;;  %p1793_p12 = scmp.lt.u32.totalorder %s2283_s8, %s2338_s3 }
 0x494   : > { %p1794_p1 = scmp.lt.u32.totalorder %s1792_s22, %s1788_s7  ;;  %p1796_p8 = scmp.lt.u32.totalorder %s1788_s7, %s2283_s8 }
 0x495   : > { %p1790_p7 = pnand %p1789_p6, %p2346_p9 }
 0x496   : > { %p1795_p3 = por %p1794_p1, %p1793_p12 }
 0x497   : > { %p1791_p10 = pneg %p1790_p7 }
 0x498   : > { %p1797_p11 = por %p1796_p8, %p1795_p3 }
 0x49a   : > { %p1798_p0 = pnand %p1797_p11, %p1791_p10 }
 0x49c   : > { %1801 = shalt.err (!%p1798_p0)
}
 0x49d   : > { %s1863_s29 = smov 128   ;;  %s1864_s30 = smov 8  }
 0x49e   : > { %1599 = dma.vmem_to_hbm [thread:$0]  (%p2346_p9), %s2277_s24, 1024, %s2283_s8, %s1222_s15, %s1863_s29, %s1863_s29, %s1864_s30  }
 0x49f PF: > { %s1252_s5 = sand.u32 1, %s1836_s12   ;;  %p2347_p5 = scmp.ne.s32.totalorder %s2343_s27, 0 }
 0x4a0   : > { %p2348_p13 = scmp.ge.s32.totalorder %s1856_s17, 2  ;;  %s1253_s6 = scalar_lea.sflag [#allocation4], %s1252_s5 }
 0x4a2   : > { %p1606_p2 = pnand %p2348_p13, %p2347_p5 }
 0x4a4   : > { %1831 = dma.done.wait (!%p1606_p2), %s1253_s6, 1024  }
 0x4a5   : > { %1833 = vsyncadd (!%p1606_p2), %s1253_s6, 4294966272  ;;  %s19_s17 = sadd.s32 1, %s1856_s17   ;;  %s2349_s12 = smov %s1840_s13 }
 0x4a6   : > { %p16_p4 = scmp.ge.s32.totalorder %s19_s17, 4   ;;  %s2350_s13 = smov %s1844_s14 }
 0x4a7   : > { %s2351_s14 = smov %s1941_s26  ;;  %s2352_s15 = smov %s1852_s16 }
 0x4a8   : > { %s2353_s16 = smov %s2355_s20  ;;  %18 = sbr.rel (!%p16_p4) target bundleno = 6 (0x6), region = 77 }
 0x4af   :  { %1258 = vsyncpa [#allocation3], 1 }
 0x4b0   :  { %1260 = vsyncpa [#allocation3 + $0x1], 1 }
 0x4b1   :  { %1261 = vsyncpa [#allocation4], 1 }
 0x4b2   :  { %1263 = vsyncpa [#allocation4 + $0x1], 1 }

</bundles_post_ra>
